<compile_context>
chip_gen: v7x
topology: tpu7x:2x2x1
jax: 0.10.0
libtpu: 0.0.40
codegen_flags: <defaults>
</compile_context>

<pallas_src>
import functools

import jax
import jax.numpy as jnp
from jax.experimental import pallas as pl
from jax.experimental.pallas import tpu as pltpu


def _stats_kernel(x_ref, mean_ref, inv_std_ref, mu_acc, std_acc, *, d_total):
    j = pl.program_id(0)

    @pl.when(j == 0)
    def _():
        mu_acc[...] = jnp.zeros_like(mu_acc)
        std_acc[...] = jnp.zeros_like(std_acc)

    x = x_ref[...].astype(jnp.float32)              # (N, tile_d) block
    nf = jnp.float32(x.shape[0])
    # One-pass moments over the batch axis (per D position).
    s1 = jnp.sum(x, axis=0, keepdims=True)          # (1, tile_d)
    s2 = jnp.sum(x * x, axis=0, keepdims=True)      # (1, tile_d)
    mu = s1 / nf
    var = (s2 - s1 * mu) / (nf - 1.0)               # unbiased (Bessel), torch default
    std = jnp.sqrt(jnp.maximum(var, 0.0))
    # Accumulate lane-wise; the final reduction sums over all lanes of all tiles.
    mu_acc[...] += mu
    std_acc[...] += std

    @pl.when(j == pl.num_programs(0) - 1)
    def _():
        d = jnp.float32(d_total)
        sum_mu = jnp.sum(mu_acc[...], axis=(0, 1), keepdims=True)    # (1, 1)
        sum_std = jnp.sum(std_acc[...], axis=(0, 1), keepdims=True)  # (1, 1)
        mean_ref[...] = sum_mu / d
        # Exact scalar reciprocal taken once; pass 2 multiplies instead of dividing.
        # (std == 0 -> inf, matching PyTorch's division-by-zero behaviour.)
        inv_std_ref[...] = d / sum_std


def _normalize_kernel(mean_ref, inv_std_ref, x_ref, o_ref):
    mean = mean_ref[0, 0]
    inv = inv_std_ref[0, 0]
    x = x_ref[...].astype(jnp.float32)
    o_ref[...] = ((x - mean) * inv).astype(o_ref.dtype)


def _pick_tile_d(n, d, max_block_elems=512 * 1024):
    # Largest lane tile (multiple of 128) dividing D under a conservative
    # per-block budget (~2 MiB f32) so default scoped-VMEM limits are enough
    # on every generation (v5e 16 MiB, v6e/v7x 32 MiB) with double buffering.
    for t in (2048, 1024, 512, 256, 128):
        if d % t == 0 and n * t <= max_block_elems:
            return t
    if d % 128 == 0:
        return 128
    # TODO(synk): D not a multiple of 128 falls back to a single full-width
    # block (legal since block == array dims); masked remainder tiles would be
    # needed to tile such shapes without biasing the lane-mean.
    return d


def oneshot_normalizer_2d(x):
    """First forward call of OneshotNormalizer2D: compute stats from x, normalize."""
    if x.ndim not in (2, 4) or x.shape[0] <= 2:
        return x  # stats() -> (0, 1): identity

    orig_shape = x.shape
    n = x.shape[0]
    x2d = x.reshape(n, -1)
    d = x2d.shape[1]
    tile_d = _pick_tile_d(n, d)
    n_tiles = d // tile_d
    itemsize = jnp.dtype(x.dtype).itemsize

    # ---- pass 1: batch statistics -> (1,1) mean and (1,1) 1/std -------------
    mean, inv_std = pl.pallas_call(
        functools.partial(_stats_kernel, d_total=d),
        out_shape=(jax.ShapeDtypeStruct((1, 1), jnp.float32),
                   jax.ShapeDtypeStruct((1, 1), jnp.float32)),
        grid_spec=pltpu.PrefetchScalarGridSpec(
            num_scalar_prefetch=0,
            grid=(n_tiles,),
            in_specs=[pl.BlockSpec((n, tile_d), lambda j: (0, j))],
            out_specs=(pl.BlockSpec((1, 1), lambda j: (0, 0)),
                       pl.BlockSpec((1, 1), lambda j: (0, 0))),
            scratch_shapes=[pltpu.VMEM((1, tile_d), jnp.float32),
                            pltpu.VMEM((1, tile_d), jnp.float32)],
        ),
        compiler_params=pltpu.CompilerParams(
            dimension_semantics=("arbitrary",)),
        cost_estimate=pl.CostEstimate(
            flops=5 * n * d, transcendentals=d,
            bytes_accessed=n * d * itemsize + 8),
    )(x2d)

    # ---- pass 2: elementwise normalize (multiply by precomputed reciprocal) --
    out = pl.pallas_call(
        _normalize_kernel,
        out_shape=jax.ShapeDtypeStruct((n, d), x.dtype),
        grid_spec=pltpu.PrefetchScalarGridSpec(
            num_scalar_prefetch=0,
            grid=(n_tiles,),
            in_specs=[pl.BlockSpec((1, 1), lambda j: (0, 0)),
                      pl.BlockSpec((1, 1), lambda j: (0, 0)),
                      pl.BlockSpec((n, tile_d), lambda j: (0, j))],
            out_specs=pl.BlockSpec((n, tile_d), lambda j: (0, j)),
        ),
        compiler_params=pltpu.CompilerParams(
            dimension_semantics=("parallel",)),
        cost_estimate=pl.CostEstimate(
            flops=2 * n * d, transcendentals=0,
            bytes_accessed=2 * n * d * itemsize + 8),
    )(mean, inv_std, x2d)

    return out.reshape(orig_shape)


def _reference(x):
    # Pure-JAX reference mirroring the PyTorch code (two-pass statistics).
    n = x.shape[0]
    if x.ndim not in (2, 4) or n <= 2:
        return x
    mean_scalar = jnp.mean(jnp.mean(x, axis=0))
    centered = x - jnp.mean(x, axis=0, keepdims=True)
    per_pos_std = jnp.sqrt(jnp.sum(centered ** 2, axis=0) / (n - 1))
    std_scalar = jnp.mean(per_pos_std)
    return (x - mean_scalar) / std_scalar


if __name__ == "__main__":
    key = jax.random.PRNGKey(0)
    # batch > 2 so the stats path is non-trivial; D = 16*16*16 = 4096 -> 2 D tiles.
    x = 3.0 * jax.random.normal(key, (4, 16, 16, 16), dtype=jnp.float32) + 1.5

    y = jax.block_until_ready(oneshot_normalizer_2d(x))
    y_ref = _reference(x)
    assert y.shape == x.shape and y.dtype == x.dtype
    err = float(jnp.max(jnp.abs(y - y_ref)))
    assert err < 1e-4, f"mismatch vs reference: {err}"

    # Identity fallback (batch <= 2 -> stats() == (0, 1)).
    x_small = jax.random.normal(jax.random.PRNGKey(1), (2, 4, 8, 8), dtype=jnp.float32)
    y_small = jax.block_until_ready(oneshot_normalizer_2d(x_small))
    assert jnp.array_equal(y_small, x_small)

    print("KERNEL_OK")
</pallas_src>

<mosaic_0001>
module attributes {stable_mosaic.version = 11 : i64} {
  func.func @_stats_kernel(%arg0: i32, %arg1: memref<4x2048xf32, #tpu.memory_space<vmem>>, %arg2: memref<1x1xf32, #tpu.memory_space<vmem>>, %arg3: memref<1x1xf32, #tpu.memory_space<vmem>>, %arg4: memref<1x2048xf32, #tpu.memory_space<vmem>>, %arg5: memref<1x2048xf32, #tpu.memory_space<vmem>>) attributes {dimension_semantics = [#tpu.dimension_semantics<arbitrary>], iteration_bounds = array<i64: 2>, scalar_prefetch = 0 : i64, scratch_operands = 2 : i64, tpu.core_type = #tpu.core_type<tc>, window_params = [{transform_indices = @transform_0, window_bounds = array<i64: 4, 2048>}, {pipeline_mode = #tpu.pipeline_mode<synchronous>, transform_indices = @transform_1, window_bounds = array<i64: 1, 1>}, {pipeline_mode = #tpu.pipeline_mode<synchronous>, transform_indices = @transform_2, window_bounds = array<i64: 1, 1>}]} {
    %c0_i32 = arith.constant 0 : i32
    %0 = arith.cmpi eq, %arg0, %c0_i32 : i32
    %1 = arith.extui %0 : i1 to i32
    %c0_i32_0 = arith.constant 0 : i32
    %2 = arith.cmpi ne, %1, %c0_i32_0 : i32
    scf.if %2 {
      %cst_16 = arith.constant 0.000000e+00 : f32
      %28 = vector.broadcast %cst_16 : f32 to vector<1x2048xf32>
      %c0_17 = arith.constant 0 : index
      %c0_18 = arith.constant 0 : index
      %29 = vector.load %arg4[%c0_17, %c0_18] : memref<1x2048xf32, #tpu.memory_space<vmem>>, vector<1x2048xf32>
      tpu.vector_store %arg4[%c0_17, %c0_18], %28 {strides = array<i32>} : memref<1x2048xf32, #tpu.memory_space<vmem>>, vector<1x2048xf32>,
      %cst_19 = arith.constant 0.000000e+00 : f32
      %30 = vector.broadcast %cst_19 : f32 to vector<1x2048xf32>
      %c0_20 = arith.constant 0 : index
      %c0_21 = arith.constant 0 : index
      %31 = vector.load %arg5[%c0_20, %c0_21] : memref<1x2048xf32, #tpu.memory_space<vmem>>, vector<1x2048xf32>
      tpu.vector_store %arg5[%c0_20, %c0_21], %30 {strides = array<i32>} : memref<1x2048xf32, #tpu.memory_space<vmem>>, vector<1x2048xf32>,
    } else {
    }
    %c0 = arith.constant 0 : index
    %c0_1 = arith.constant 0 : index
    %3 = vector.load %arg1[%c0, %c0_1] : memref<4x2048xf32, #tpu.memory_space<vmem>>, vector<4x2048xf32>
    %cst = arith.constant dense<0.000000e+00> : vector<2048xf32>
    %4 = vector.multi_reduction <add>, %3, %cst [0] : vector<4x2048xf32> to vector<2048xf32>
    %5 = vector.shape_cast %4 : vector<2048xf32> to vector<1x2048xf32>
    %6 = arith.mulf %3, %3 : vector<4x2048xf32>
    %cst_2 = arith.constant dense<0.000000e+00> : vector<2048xf32>
    %7 = vector.multi_reduction <add>, %6, %cst_2 [0] : vector<4x2048xf32> to vector<2048xf32>
    %8 = vector.shape_cast %7 : vector<2048xf32> to vector<1x2048xf32>
    %cst_3 = arith.constant 4.000000e+00 : f32
    %9 = vector.broadcast %cst_3 : f32 to vector<1x2048xf32>
    %10 = arith.divf %5, %9 : vector<1x2048xf32>
    %11 = arith.mulf %5, %10 : vector<1x2048xf32>
    %12 = arith.subf %8, %11 : vector<1x2048xf32>
    %cst_4 = arith.constant 4.000000e+00 : f32
    %cst_5 = arith.constant 1.000000e+00 : f32
    %13 = arith.subf %cst_4, %cst_5 : f32
    %14 = vector.broadcast %13 : f32 to vector<1x2048xf32>
    %15 = arith.divf %12, %14 : vector<1x2048xf32>
    %cst_6 = arith.constant 0.000000e+00 : f32
    %16 = vector.broadcast %cst_6 : f32 to vector<1x2048xf32>
    %17 = arith.maximumf %15, %16 : vector<1x2048xf32>
    %18 = math.sqrt %17 : vector<1x2048xf32>
    %c0_7 = arith.constant 0 : index
    %c0_8 = arith.constant 0 : index
    %19 = vector.load %arg4[%c0_7, %c0_8] : memref<1x2048xf32, #tpu.memory_space<vmem>>, vector<1x2048xf32>
    %20 = arith.addf %19, %10 : vector<1x2048xf32>
    %c0_9 = arith.constant 0 : index
    %c0_10 = arith.constant 0 : index
    %21 = vector.load %arg4[%c0_9, %c0_10] : memref<1x2048xf32, #tpu.memory_space<vmem>>, vector<1x2048xf32>
    tpu.vector_store %arg4[%c0_9, %c0_10], %20 {strides = array<i32>} : memref<1x2048xf32, #tpu.memory_space<vmem>>, vector<1x2048xf32>,
    %c0_11 = arith.constant 0 : index
    %c0_12 = arith.constant 0 : index
    %22 = vector.load %arg5[%c0_11, %c0_12] : memref<1x2048xf32, #tpu.memory_space<vmem>>, vector<1x2048xf32>
    %23 = arith.addf %22, %18 : vector<1x2048xf32>
    %c0_13 = arith.constant 0 : index
    %c0_14 = arith.constant 0 : index
    %24 = vector.load %arg5[%c0_13, %c0_14] : memref<1x2048xf32, #tpu.memory_space<vmem>>, vector<1x2048xf32>
    tpu.vector_store %arg5[%c0_13, %c0_14], %23 {strides = array<i32>} : memref<1x2048xf32, #tpu.memory_space<vmem>>, vector<1x2048xf32>,
    %c1_i32 = arith.constant 1 : i32
    %25 = arith.cmpi eq, %arg0, %c1_i32 : i32
    %26 = arith.extui %25 : i1 to i32
    %c0_i32_15 = arith.constant 0 : i32
    %27 = arith.cmpi ne, %26, %c0_i32_15 : i32
    scf.if %27 {
      %c0_16 = arith.constant 0 : index
      %c0_17 = arith.constant 0 : index
      %28 = vector.load %arg4[%c0_16, %c0_17] : memref<1x2048xf32, #tpu.memory_space<vmem>>, vector<1x2048xf32>
      %29 = vector.shape_cast %28 : vector<1x2048xf32> to vector<1x1x2048xf32>
      %cst_18 = arith.constant dense<0.000000e+00> : vector<1xf32>
      %30 = vector.multi_reduction <add>, %29, %cst_18 [1, 2] : vector<1x1x2048xf32> to vector<1xf32>
      %31 = vector.shape_cast %30 : vector<1xf32> to vector<1x1x1xf32>
      %32 = vector.extract %31[0, 0, 0] : f32 from vector<1x1x1xf32>
      %33 = vector.broadcast %32 : f32 to vector<1x1xf32>
      %c0_19 = arith.constant 0 : index
      %c0_20 = arith.constant 0 : index
      %34 = vector.load %arg5[%c0_19, %c0_20] : memref<1x2048xf32, #tpu.memory_space<vmem>>, vector<1x2048xf32>
      %35 = vector.shape_cast %34 : vector<1x2048xf32> to vector<1x1x2048xf32>
      %cst_21 = arith.constant dense<0.000000e+00> : vector<1xf32>
      %36 = vector.multi_reduction <add>, %35, %cst_21 [1, 2] : vector<1x1x2048xf32> to vector<1xf32>
      %37 = vector.shape_cast %36 : vector<1xf32> to vector<1x1x1xf32>
      %38 = vector.extract %37[0, 0, 0] : f32 from vector<1x1x1xf32>
      %39 = vector.broadcast %38 : f32 to vector<1x1xf32>
      %cst_22 = arith.constant 4.096000e+03 : f32
      %40 = vector.broadcast %cst_22 : f32 to vector<1x1xf32>
      %41 = arith.divf %33, %40 : vector<1x1xf32>
      %c0_23 = arith.constant 0 : index
      %c0_24 = arith.constant 0 : index
      %42 = vector.load %arg2[%c0_23, %c0_24] : memref<1x1xf32, #tpu.memory_space<vmem>>, vector<1x1xf32>
      tpu.vector_store %arg2[%c0_23, %c0_24], %41 {strides = array<i32>} : memref<1x1xf32, #tpu.memory_space<vmem>>, vector<1x1xf32>,
      %cst_25 = arith.constant 4.096000e+03 : f32
      %43 = vector.broadcast %cst_25 : f32 to vector<1x1xf32>
      %44 = arith.divf %43, %39 : vector<1x1xf32>
      %c0_26 = arith.constant 0 : index
      %c0_27 = arith.constant 0 : index
      %45 = vector.load %arg3[%c0_26, %c0_27] : memref<1x1xf32, #tpu.memory_space<vmem>>, vector<1x1xf32>
      tpu.vector_store %arg3[%c0_26, %c0_27], %44 {strides = array<i32>} : memref<1x1xf32, #tpu.memory_space<vmem>>, vector<1x1xf32>,
    } else {
    }
    return
  }
  func.func @transform_0(%arg0: i32) -> (i32, i32) {
    %c0_i32 = arith.constant 0 : i32
    %c0_i32_0 = arith.constant 0 : i32
    return %c0_i32, %arg0 : i32, i32
  }
  func.func @transform_1(%arg0: i32) -> (i32, i32) {
    %c0_i32 = arith.constant 0 : i32
    %c0_i32_0 = arith.constant 0 : i32
    %c0_i32_1 = arith.constant 0 : i32
    return %c0_i32, %c0_i32_0 : i32, i32
  }
  func.func @transform_2(%arg0: i32) -> (i32, i32) {
    %c0_i32 = arith.constant 0 : i32
    %c0_i32_0 = arith.constant 0 : i32
    %c0_i32_1 = arith.constant 0 : i32
    return %c0_i32, %c0_i32_0 : i32, i32
  }
}

</mosaic_0001>

<bundles_post_ra>
// kernel: tpu_custom_call.1
= control target key start
LH: loop header
LB: loop body
LE: loop exit
PB: predicated region body
PF: predicated region fallthrough
CT: control target
= control target key end

     0   :  { %8 = vsyncpa [#allocation5], 0  ;;  %s2293_s0 = inlined_call_operand.hbm [shape: f32[4,4096], index: 0, kind: input, shape index: {}]   ;;  %s2294_s1 = inlined_call_operand.hbm [shape: f32[1,1], index: 1, kind: output, shape index: {0}]   ;;  %s2295_s2 = inlined_call_operand.hbm [shape: f32[1,1], index: 2, kind: output, shape index: {1}]  }
   0x1   :  { %10 = vsyncpa [#allocation5 + $0x1], 0 }
   0x2   :  { %11 = vsyncpa [#allocation6], 0 }
   0x3   :  { %12 = vsyncpa [#allocation9], 0  ;;  %s1488_s9 = smov 0   ;;  %s1490_s10 = smov 0  }
   0x4   :  { %s1492_s11 = smov 0   ;;  %s1494_s12 = smov 0  }
   0x5 LB: > { %s1507_s13 = sadd.s32 4294967295, %s1466_s12   ;;  %s1510_s14 = sadd.s32 1, %s1466_s12   ;;  %s1466_s12 = sphi %s1494_s12, %s2318_s12   ;;  %s1462_s11 = sphi %s1492_s11, %s2317_s11   ;;  %s1458_s10 = sphi %s1490_s10, %s2316_s10   ;;  %s1454_s9 = sphi %s1488_s9, %s2315_s9  }
   0x6   : > { %s22_s15 = ssub.s32 %s1466_s12, %s1510_s14  ;;  %s25_s16 = sadd.s32 1, %s1462_s11 }
   0x7   : > { %p23_p0 = scmp.eq.s32.totalorder %s22_s15, 0  ;;  %p32_p1 = scmp.ne.s32.totalorder %s1462_s11, %s1458_s10 }
   0x8   : > { %p33_p2 = scmp.eq.s32.totalorder %s1466_s12, 0  ;;  %p38_p3 = scmp.ne.s32.totalorder %s1458_s10, %s1454_s9 }
   0x9   : > { %s1520_s17 = scalar_select %p23_p0, %s1462_s11, %s25_s16  }
   0xa   : > { %p34_p4 = por %p33_p2, %p32_p1  ;;  %p39_p5 = scmp.eq.s32.totalorder %s1507_s13, 0 }
   0xb   : > { %p1259_p6 = scmp.lt.s32.totalorder %s1466_s12, 2  ;;  %s104_s19 = sand.u32 1, %s1462_s11  }
   0xc   : > { %p1524_p7 = por %p39_p5, %p38_p3  ;;  %s1227_s20 = sshll.u32 %s104_s19, 6 }
   0xd   : > { %s1240_s21 = sshll.u32 %s1466_s12, 10  ;;  %s108_s25 = scalar_lea.vmem [#allocation4], %s1227_s20 }
   0xe   : > { %s1533_s24 = scalar_lea.hbm %s2293_s0, %s1240_s21  ;;  %s116_s26 = sshll.u32 %s108_s25, 4  ;;  %s1535_s26 = int_to_ptr.vmem [resolvable:$true] %s116_s26 }
   0xf   : > { %p1537_p8 = pnand %p1259_p6, %p34_p4  ;;  %s105_s28 = scalar_lea.sflag [#allocation5], %s104_s19 }
  0x10   : > { %s1342_s29 = scalar_lea.hbm %s1533_s24, 1024  ;;  %s1347_s4 = scalar_lea.hbm %s2293_s0, 2048 }
  0x11   : > { %p1343_p11 = scmp.ne.s32.totalorder %s1533_s24, %s1342_s29  ;;  %p1344_p12 = pneg %p1537_p8 }
  0x12   : > { %p1348_p1 = scmp.lt.u32.totalorder %s1533_s24, %s2293_s0  ;;  %p1349_p2 = scmp.lt.u32.totalorder %s1347_s4, %s1342_s29 }
  0x13   : > { %p1345_p13 = pnand %p1344_p12, %p1343_p11  ;;  %p1351_p4 = scmp.lt.u32.totalorder %s1342_s29, %s1533_s24 }
  0x14   : > { %p1350_p3 = por %p1349_p2, %p1348_p1 }
  0x15   : > { %p1346_p0 = pneg %p1345_p13 }
  0x16   : > { %p1352_p5 = por %p1351_p4, %p1350_p3 }
  0x18   : > { %p1353_p6 = pnand %p1352_p5, %p1346_p0 }
  0x1a   : > { %1356 = shalt.err (!%p1353_p6)
}
  0x1b   : > { %s1357_s7 = scalar_lea.vmem %s1535_s26, 1024  ;;  %s1468_s8 = smov [#allocation4]  }
  0x1c   : > { %p1358_p11 = scmp.ne.s32.totalorder %s1535_s26, %s1357_s7  ;;  %s1362_s9 = sshll.u32 %s1468_s8, 4  ;;  %s1363_s9 = int_to_ptr.vmem [resolvable:$false] %s1362_s9 }
  0x1d   : > { %s1364_s15 = scalar_lea.vmem %s1363_s9, 2048  ;;  %p1365_p10 = scmp.lt.s32.totalorder %s1535_s26, %s1363_s9 }
  0x1e   : > { %p1360_p13 = pnand %p1358_p11, %p1344_p12  ;;  %p1366_p1 = scmp.lt.s32.totalorder %s1364_s15, %s1357_s7 }
  0x20   : > { %p1361_p9 = pneg %p1360_p13  ;;  %p1367_p2 = por %p1366_p1, %p1365_p10 }
  0x22   : > { %p1368_p3 = pnand %p1367_p2, %p1361_p9 }
  0x24   : > { %1371 = shalt.err (!%p1368_p3)
}
  0x25   : > { %1258 = dma.hbm_to_vmem [thread:$0]  (!%p1537_p8), %s1533_s24, 1024, %s1535_s26, %s105_s28  }
  0x26   : > { %p2300_p0 = scmp.lt.s32.totalorder %s1466_s12, 3  ;;  %p2301_p4 = scmp.ge.s32.totalorder %s1466_s12, 1 }
  0x28   : > { %p122_p12 = pnand %p2301_p4, %p2300_p0 }
  0x2a   : > { %125 = sbr.rel (%p122_p12) target bundleno = 501 (0x1f5), region = 24 }
  0x31   : > { %s127_s16 = sand.u32 1, %s1458_s10  }
  0x32   : > { %s1231_s19 = sshll.u32 %s127_s16, 6  ;;  %s128_s20 = scalar_lea.sflag [#allocation5], %s127_s16 }
  0x33   : > { %s1573_s21 = scalar_lea.vmem [#allocation4], %s1231_s19 }
  0x34   : > { %1441 = dma.done.wait (%p1524_p7), %s128_s20, 1024  }
  0x35   : > { %1443 = vsyncadd (%p1524_p7), %s128_s20, 4294966272  ;;  %p1232_p9 = scmp.ne.s32.totalorder %s1507_s13, 0 }
  0x36   : > { %v1469_v0 = vmov (!%p1232_p9), 0.0  }
  0x37   : > { %151 = sbr.rel (%p1232_p9) target bundleno = 62 (0x3e), region = 32  ;;  %152 = vst [vmem:[#allocation2] sm:$0xff] (!%p1232_p9), %v1469_v0  ;;  %153 = vst [vmem:[#allocation2 + $0x8] sm:$0xff] (!%p1232_p9), %v1469_v0 }
  0x38   : > { %154 = vst [vmem:[#allocation3] sm:$0xff] (!%p1232_p9), %v1469_v0  ;;  %155 = vst [vmem:[#allocation3 + $0x8] sm:$0xff] (!%p1232_p9), %v1469_v0 }
  0x3e PF: > { %v1581_v1 = vld [vmem:[%s1573_s21] sm:$0xff]  ;;  %v1584_v2 = vld [vmem:[%s1573_s21 + $0x8] sm:$0xff]  ;;  %v1587_v3 = vld [vmem:[%s1573_s21 + $0x10] sm:$0xff]  ;;  %vm188_vm0 = vcmask 1043456   ;;  %p1233_p7 = scmp.ne.s32.totalorder %s1507_s13, 1 }
  0x3f   : > { %v1590_v4 = vld [vmem:[%s1573_s21 + $0x18] sm:$0xff]  ;;  %v172_v5 = vcombine.high %v1581_v1, %v1581_v1  ;;  %v173_v6 = vcombine.high %v1584_v2, %v1584_v2  ;;  %v174_v7 = vcombine.high %v1587_v3, %v1587_v3  ;;  %v189_v8 = vsel %vm188_vm0, %v1581_v1, 0.0  ;;  %v1613_v33 = vld [vmem:[%s1573_s21 + $0x20] sm:$0xff]  ;;  %v1616_v39 = vld [vmem:[%s1573_s21 + $0x28] sm:$0xff] }
  0x40   : > { %v190_v9 = vrot.slane %v189_v8, 4  ;;  %v175_v10 = vcombine.high %v1590_v4, %v1590_v4  ;;  %v203_v12 = vsel %vm188_vm0, %v1584_v2, 0.0  ;;  %v217_v18 = vsel %vm188_vm0, %v1587_v3, 0.0  ;;  %v1619_v40 = vld [vmem:[%s1573_s21 + $0x30] sm:$0xff]  ;;  %v1622_v41 = vld [vmem:[%s1573_s21 + $0x38] sm:$0xff] }
  0x41   : > { %v196_v11 = vsel %vm188_vm0, %v172_v5, 0.0  ;;  %v204_v15 = vrot.slane %v203_v12, 4  ;;  %v210_v16 = vsel %vm188_vm0, %v173_v6, 0.0  ;;  %v224_v19 = vsel %vm188_vm0, %v174_v7, 0.0 }
  0x42   : > { %v191_v13 = vadd.f32 %v190_v9, %v189_v8  ;;  %v197_v14 = vrot.slane %v196_v11, 4  ;;  %v211_v17 = vrot.slane %v210_v16, 4  ;;  %v231_v20 = vsel %vm188_vm0, %v1590_v4, 0.0 }
  0x43   : > { %v205_v23 = vadd.f32 %v204_v15, %v203_v12  ;;  %v218_v24 = vrot.slane %v217_v18, 4  ;;  %v225_v26 = vrot.slane %v224_v19, 4  ;;  %v232_v27 = vrot.slane %v231_v20, 4 }
  0x44   : > { %v192_v21 = vrot.slane %v191_v13, 2  ;;  %v198_v22 = vadd.f32 %v197_v14, %v196_v11  ;;  %v212_v25 = vadd.f32 %v211_v17, %v210_v16  ;;  %v238_v28 = vsel %vm188_vm0, %v175_v10, 0.0 }
  0x45   : > { %v206_v31 = vrot.slane %v205_v23, 2  ;;  %v219_v32 = vadd.f32 %v218_v24, %v217_v18  ;;  %v226_v35 = vadd.f32 %v225_v26, %v224_v19  ;;  %v233_v36 = vadd.f32 %v232_v27, %v231_v20 }
  0x46   : > { %v193_v29 = vadd.f32 %v192_v21, %v191_v13  ;;  %v199_v30 = vrot.slane %v198_v22, 2  ;;  %v213_v34 = vrot.slane %v212_v25, 2  ;;  %v239_v37 = vrot.slane %v238_v28, 4 }
  0x47   : > { %v207_v43 = vadd.f32 %v206_v31, %v205_v23  ;;  %v220_v44 = vrot.slane %v219_v32, 2  ;;  %v176_v46 = vcombine.high %v1613_v33, %v1613_v33  ;;  %v227_v49 = vrot.slane %v226_v35, 2 }
  0x48   : > { %v200_v38 = vadd.f32 %v199_v30, %v198_v22  ;;  %v194_v42 = vrot.slane %v193_v29, 1  ;;  %v240_v45 = vadd.f32 %v239_v37, %v238_v28  ;;  %v214_v47 = vadd.f32 %v213_v34, %v212_v25 }
  0x49   : > { %v234_v50 = vrot.slane %v233_v36, 2  ;;  %v177_v52 = vcombine.high %v1616_v39, %v1616_v39  ;;  %v178_v53 = vcombine.high %v1619_v40, %v1619_v40  ;;  %v179_v54 = vcombine.high %v1622_v41, %v1622_v41 }
  0x4a   : > { %v201_v48 = vrot.slane %v200_v38, 1  ;;  %v245_v55 = vsel %vm188_vm0, %v1613_v33, 0.0  ;;  %v1634_v56 = vadd.f32 %v194_v42, %v193_v29  ;;  %v208_v57 = vrot.slane %v207_v43, 1 }
  0x4b   : > { %v221_v58 = vadd.f32 %v220_v44, %v219_v32  ;;  %v241_v59 = vrot.slane %v240_v45, 2  ;;  %v215_v60 = vrot.slane %v214_v47, 1  ;;  %v246_v61 = vrot.slane %v245_v55, 4 }
  0x4c   : > { %v252_v62 = vsel %vm188_vm0, %v176_v46, 0.0  ;;  %v259_v63 = vsel %vm188_vm0, %v1616_v39, 0.0  ;;  %v1639_v0 = vadd.f32 %v201_v48, %v200_v38  ;;  %v228_v5 = vadd.f32 %v227_v49, %v226_v35 }
  0x4d   : > { %v235_v6 = vadd.f32 %v234_v50, %v233_v36  ;;  %v253_v7 = vrot.slane %v252_v62, 4  ;;  %v247_v8 = vadd.f32 %v246_v61, %v245_v55  ;;  %v260_v9 = vrot.slane %v259_v63, 4 }
  0x4e   : > { %v266_v10 = vsel %vm188_vm0, %v177_v52, 0.0  ;;  %v273_v11 = vsel %vm188_vm0, %v1619_v40, 0.0  ;;  %v242_v12 = vadd.f32 %v241_v59, %v240_v45  ;;  %v280_v18 = vsel %vm188_vm0, %v178_v53, 0.0 }
  0x4f   : > { %v254_v13 = vadd.f32 %v253_v7, %v252_v62  ;;  %v267_v14 = vrot.slane %v266_v10, 4  ;;  %v274_v15 = vrot.slane %v273_v11, 4  ;;  %v248_v16 = vrot.slane %v247_v8, 2 }
  0x50   : > { %v261_v17 = vadd.f32 %v260_v9, %v259_v63  ;;  %v287_v19 = vsel %vm188_vm0, %v1622_v41, 0.0  ;;  %v281_v23 = vrot.slane %v280_v18, 4  ;;  %v294_v27 = vsel %vm188_vm0, %v179_v54, 0.0 }
  0x51   : > { %v255_v20 = vrot.slane %v254_v13, 2  ;;  %v268_v21 = vadd.f32 %v267_v14, %v266_v10  ;;  %v275_v22 = vadd.f32 %v274_v15, %v273_v11  ;;  %v249_v24 = vadd.f32 %v248_v16, %v247_v8 }
  0x52   : > { %v262_v25 = vrot.slane %v261_v17, 2  ;;  %v288_v26 = vrot.slane %v287_v19, 4  ;;  %v282_v31 = vadd.f32 %v281_v23, %v280_v18  ;;  %v1648_v32 = vadd.f32 %v208_v57, %v207_v43 }
  0x53   : > { %v256_v28 = vadd.f32 %v255_v20, %v254_v13  ;;  %v269_v29 = vrot.slane %v268_v21, 2  ;;  %v276_v30 = vrot.slane %v275_v22, 2  ;;  %v295_v36 = vrot.slane %v294_v27, 4 }
  0x54   : > { %v263_v34 = vadd.f32 %v262_v25, %v261_v17  ;;  %v289_v35 = vadd.f32 %v288_v26, %v287_v19  ;;  %v222_v37 = vrot.slane %v221_v58, 1  ;;  %v229_v38 = vrot.slane %v228_v5, 1 }
  0x55   : > { %v270_v42 = vadd.f32 %v269_v29, %v268_v21  ;;  %v283_v44 = vrot.slane %v282_v31, 2  ;;  %v1650_v45 = vadd.f32 %v215_v60, %v214_v47  ;;  %v236_v46 = vrot.slane %v235_v6, 1 }
  0x56   : > { %v290_v48 = vrot.slane %v289_v35, 2  ;;  %v296_v49 = vadd.f32 %v295_v36, %v294_v27  ;;  %v243_v50 = vrot.slane %v242_v12, 1  ;;  %v250_v52 = vrot.slane %v249_v24, 1 }
  0x57   : > { %v257_v53 = vrot.slane %v256_v28, 1  ;;  %v1652_v54 = vadd.f32 %v276_v30, %v275_v22  ;;  %v264_v55 = vrot.slane %v263_v34, 1  ;;  %v271_v43 = vrot.slane %v270_v42, 1 }
  0x58   : > { %v1654_v57 = vadd.f32 %v283_v44, %v282_v31  ;;  %v301_v59 = vmul.f32 %v1581_v1, %v1581_v1  ;;  %v1658_v61 = vadd.f32 %v222_v37, %v221_v58  ;;  %v1660_v62 = vadd.f32 %v229_v38, %v228_v5 }
  0x59   : > { %v1662_v47 = vadd.f32 %v290_v48, %v289_v35  ;;  %v302_v60 = vmul.f32 %v1584_v2, %v1584_v2  ;;  %v1666_v63 = vadd.f32 %v236_v46, %v235_v6  ;;  %v297_v7 = vrot.slane %v296_v49, 2 }
  0x5a   : > { %v303_v8 = vmul.f32 %v1587_v3, %v1587_v3  ;;  %v304_v9 = vmul.f32 %v1590_v4, %v1590_v4  ;;  %v1672_v10 = vadd.f32 %v243_v50, %v242_v12  ;;  %v1674_v1 = vadd.f32 %v250_v52, %v249_v24 }
  0x5b   : > { %v1676_v58 = vadd.f32 %v257_v53, %v256_v28  ;;  %v278_v5 = vrot.slane %v1652_v54, 1  ;;  %v1679_v11 = vadd.f32 %v264_v55, %v263_v34  ;;  %v1681_v2 = vadd.f32 %v271_v43, %v270_v42 }
  0x5c   : > { %v285_v6 = vrot.slane %v1654_v57, 1  ;;  %v317_v13 = vcombine.high %v301_v59, %v301_v59  ;;  %v292_v3 = vrot.slane %v1662_v47, 1  ;;  %v318_v14 = vcombine.high %v302_v60, %v302_v60 }
  0x5d   : > { %v319_v15 = vcombine.high %v303_v8, %v303_v8  ;;  %v320_v4 = vcombine.high %v304_v9, %v304_v9  ;;  %v298_v12 = vadd.f32 %v297_v7, %v296_v49  ;;  %v305_v16 = vmul.f32 %v1613_v33, %v1613_v33 }
  0x5e   : > { %v306_v17 = vmul.f32 %v1616_v39, %v1616_v39  ;;  %v1691_v18 = vmul.f32 %v1619_v40, %v1619_v40  ;;  %v333_v19 = vsel %vm188_vm0, %v301_v59, 0.0  ;;  %v340_v20 = vsel %vm188_vm0, %v317_v13, 0.0 }
  0x5f   : > { %v347_v21 = vsel %vm188_vm0, %v302_v60, 0.0  ;;  %v354_v22 = vsel %vm188_vm0, %v318_v14, 0.0  ;;  %v334_v23 = vrot.slane %v333_v19, 4  ;;  %v341_v24 = vrot.slane %v340_v20, 4 }
  0x60   : > { %v348_v25 = vrot.slane %v347_v21, 4  ;;  %v355_v26 = vrot.slane %v354_v22, 4  ;;  %v361_v33 = vsel %vm188_vm0, %v303_v8, 0.0  ;;  %v368_v39 = vsel %vm188_vm0, %v319_v15, 0.0 }
  0x61   : > { %v375_v27 = vsel %vm188_vm0, %v304_v9, 0.0  ;;  %v382_v40 = vsel %vm188_vm0, %v320_v4, 0.0  ;;  %v335_v28 = vadd.f32 %v334_v23, %v333_v19  ;;  %v342_v29 = vadd.f32 %v341_v24, %v340_v20 }
  0x62   : > { %v349_v30 = vadd.f32 %v348_v25, %v347_v21  ;;  %v356_v31 = vadd.f32 %v355_v26, %v354_v22  ;;  %v362_v34 = vrot.slane %v361_v33, 4  ;;  %v369_v35 = vrot.slane %v368_v39, 4 }
  0x63   : > { %v376_v36 = vrot.slane %v375_v27, 4  ;;  %v383_v37 = vrot.slane %v382_v40, 4  ;;  %v336_v38 = vrot.slane %v335_v28, 2  ;;  %v343_v42 = vrot.slane %v342_v29, 2 }
  0x64   : > { %v350_v44 = vrot.slane %v349_v30, 2  ;;  %v357_v46 = vrot.slane %v356_v31, 2  ;;  %v363_v48 = vadd.f32 %v362_v34, %v361_v33  ;;  %v370_v49 = vadd.f32 %v369_v35, %v368_v39 }
  0x65   : > { %v377_v50 = vadd.f32 %v376_v36, %v375_v27  ;;  %v384_v52 = vadd.f32 %v383_v37, %v382_v40  ;;  %v299_v53 = vrot.slane %v298_v12, 1  ;;  %v308_v55 = vmul.f32 %v1622_v41, %v1622_v41 }
  0x66   : > { %v1703_v43 = vadd.f32 %v336_v38, %v335_v28  ;;  %v1705_v59 = vadd.f32 %v343_v42, %v342_v29  ;;  %v1707_v60 = vadd.f32 %v350_v44, %v349_v30  ;;  %v1709_v7 = vadd.f32 %v357_v46, %v356_v31 }
  0x67   : > { %v364_v8 = vrot.slane %v363_v48, 2  ;;  %v371_v9 = vrot.slane %v370_v49, 2  ;;  %v1712_v13 = vadd.f32 %v278_v5, %v1652_v54  ;;  %v1715_v14 = vadd.f32 %v285_v6, %v1654_v57 }
  0x68   : > { %v321_v15 = vcombine.high %v305_v16, %v305_v16  ;;  %v322_v4 = vcombine.high %v306_v17, %v306_v17  ;;  %v378_v20 = vrot.slane %v377_v50, 2  ;;  %v385_v21 = vrot.slane %v384_v52, 2 }
  0x69   : > { %v1717_v19 = vadd.f32 %v364_v8, %v363_v48  ;;  %v1719_v41 = vadd.f32 %v371_v9, %v370_v49  ;;  %v1722_v22 = vadd.f32 %v292_v3, %v1662_v47  ;;  %v1724_v23 = vadd.f32 %v299_v53, %v298_v12 }
  0x6a   : > { %v323_v54 = vcombine.high %v1691_v18, %v1691_v18  ;;  %v324_v5 = vcombine.high %v308_v55, %v308_v55  ;;  %v338_v57 = vrot.slane %v1703_v43, 1  ;;  %v345_v6 = vrot.slane %v1705_v59, 1 }
  0x6b   : > { %2302 = vst [vmem:[#allocation13_spill] sm:$0xff] %v1722_v22  ;;  %2303 = vst [vmem:[#allocation14_spill] sm:$0xff] %v1724_v23  ;;  %v352_v24 = vrot.slane %v1707_v60, 1  ;;  %v359_v25 = vrot.slane %v1709_v7, 1  ;;  %v389_v26 = vsel %vm188_vm0, %v305_v16, 0.0  ;;  %v396_v33 = vsel %vm188_vm0, %v321_v15, 0.0 }
  0x6c   : > { %v403_v47 = vsel %vm188_vm0, %v306_v17, 0.0  ;;  %v410_v3 = vsel %vm188_vm0, %v322_v4, 0.0  ;;  %v366_v12 = vrot.slane %v1717_v19, 1  ;;  %v373_v39 = vrot.slane %v1719_v41, 1 }
  0x6d   : > { %v379_v27 = vadd.f32 %v378_v20, %v377_v50  ;;  %v386_v40 = vadd.f32 %v385_v21, %v384_v52  ;;  %v390_v28 = vrot.slane %v389_v26, 4  ;;  %v397_v29 = vrot.slane %v396_v33, 4 }
  0x6e   : > { %v404_v30 = vrot.slane %v403_v47, 4  ;;  %v411_v31 = vrot.slane %v410_v3, 4  ;;  %v417_v34 = vsel %vm188_vm0, %v1691_v18, 0.0  ;;  %v424_v16 = vsel %vm188_vm0, %v323_v54, 0.0 }
  0x6f   : > { %v431_v35 = vsel %vm188_vm0, %v308_v55, 0.0  ;;  %v438_v17 = vsel %vm188_vm0, %v324_v5, 0.0  ;;  %v391_v36 = vadd.f32 %v390_v28, %v389_v26  ;;  %v398_v37 = vadd.f32 %v397_v29, %v396_v33 }
  0x70   : > { %v405_v38 = vadd.f32 %v404_v30, %v403_v47  ;;  %v412_v42 = vadd.f32 %v411_v31, %v410_v3  ;;  %v418_v44 = vrot.slane %v417_v34, 4  ;;  %v425_v46 = vrot.slane %v424_v16, 4 }
  0x71   : > { %v432_v48 = vrot.slane %v431_v35, 4  ;;  %v439_v49 = vrot.slane %v438_v17, 4  ;;  %v392_v50 = vrot.slane %v391_v36, 2  ;;  %v399_v52 = vrot.slane %v398_v37, 2 }
  0x72   : > { %v406_v53 = vrot.slane %v405_v38, 2  ;;  %v413_v8 = vrot.slane %v412_v42, 2  ;;  %v419_v9 = vadd.f32 %v418_v44, %v417_v34  ;;  %v426_v18 = vadd.f32 %v425_v46, %v424_v16 }
  0x73   : > { %v433_v15 = vadd.f32 %v432_v48, %v431_v35  ;;  %v440_v4 = vadd.f32 %v439_v49, %v438_v17  ;;  %v393_v20 = vadd.f32 %v392_v50, %v391_v36  ;;  %v400_v55 = vadd.f32 %v399_v52, %v398_v37 }
  0x74   : > { %v407_v21 = vadd.f32 %v406_v53, %v405_v38  ;;  %v414_v54 = vadd.f32 %v413_v8, %v412_v42  ;;  %v420_v5 = vrot.slane %v419_v9, 2  ;;  %v427_v26 = vrot.slane %v426_v18, 2 }
  0x75   : > { %v434_v33 = vrot.slane %v433_v15, 2  ;;  %v441_v47 = vrot.slane %v440_v4, 2  ;;  %v380_v3 = vrot.slane %v379_v27, 1  ;;  %v387_v28 = vrot.slane %v386_v40, 1 }
  0x76   : > { %v394_v29 = vrot.slane %v393_v20, 1  ;;  %v401_v30 = vrot.slane %v400_v55, 1  ;;  %v421_v31 = vadd.f32 %v420_v5, %v419_v9  ;;  %v428_v51 = vadd.f32 %v427_v26, %v426_v18  ;;  %v2305_v5 = vld [vmem:[#allocation14_spill] sm:$0xff] }
  0x77   : > { %v435_v23 = vadd.f32 %v434_v33, %v433_v15  ;;  %v442_v22 = vadd.f32 %v441_v47, %v440_v4  ;;  %v1744_v34 = vadd.f32 %v338_v57, %v1703_v43  ;;  %v1747_v16 = vadd.f32 %v345_v6, %v1705_v59 }
  0x78   : > { %v408_v35 = vrot.slane %v407_v21, 1  ;;  %v415_v17 = vrot.slane %v414_v54, 1  ;;  %v1750_v36 = vadd.f32 %v352_v24, %v1707_v60  ;;  %v1753_v37 = vadd.f32 %v359_v25, %v1709_v7 }
  0x79   : > { %v422_v38 = vrot.slane %v421_v31, 1  ;;  %v429_v42 = vrot.slane %v428_v51, 1  ;;  %v1756_v44 = vadd.f32 %v366_v12, %v1717_v19  ;;  %v1759_v46 = vadd.f32 %v373_v39, %v1719_v41 }
  0x7a   : > { %v436_v43 = vrot.slane %v435_v23, 1  ;;  %v443_v57 = vrot.slane %v442_v22, 1  ;;  %v1761_v59 = vadd.f32 %v380_v3, %v379_v27  ;;  %v1763_v6 = vadd.f32 %v387_v28, %v386_v40 }
  0x7b   : > { %v1765_v48 = vadd.f32 %v394_v29, %v393_v20  ;;  %v1767_v60 = vadd.f32 %v401_v30, %v400_v55  ;;  %v1769_v7 = vadd.f32 %v408_v35, %v407_v21  ;;  %v1771_v24 = vadd.f32 %v415_v17, %v414_v54  ;;  %v2304_v20 = vld [vmem:[#allocation13_spill] sm:$0xff] }
  0x7c   : > { %v1774_v19 = vmul.f32 0.25, %v1634_v56  ;;  %v1777_v41 = vmul.f32 0.25, %v1639_v0  ;;  %v1779_v25 = vadd.f32 %v422_v38, %v421_v31  ;;  %v1781_v12 = vadd.f32 %v429_v42, %v428_v51 }
  0x7d   : > { %v1784_v39 = vmul.f32 0.25, %v1648_v32  ;;  %v1787_v27 = vmul.f32 0.25, %v1650_v45  ;;  %v1789_v40 = vadd.f32 %v436_v43, %v435_v23  ;;  %v1791_v49 = vadd.f32 %v443_v57, %v442_v22 }
  0x7e   : > { %v1794_v50 = vmul.f32 0.25, %v1658_v61  ;;  %v1797_v52 = vmul.f32 0.25, %v1660_v62  ;;  %v1800_v53 = vmul.f32 0.25, %v1666_v63  ;;  %v1803_v51 = vmul.f32 0.25, %v1672_v10 }
  0x7f   : > { %v1806_v8 = vmul.f32 0.25, %v1674_v1  ;;  %v1809_v23 = vmul.f32 0.25, %v1676_v58  ;;  %v1812_v22 = vmul.f32 0.25, %v1679_v11  ;;  %v1815_v9 = vmul.f32 0.25, %v1681_v2 }
  0x80   : > { %v1818_v18 = vmul.f32 0.25, %v1712_v13  ;;  %v462_v15 = vmul.f32 %v1774_v19, %v1634_v56  ;;  %v1823_v4 = vmul.f32 0.25, %v1715_v14  ;;  %v1826_v55 = vmul.f32 0.25, %v2304_v20 }
  0x81   : > { %v463_v21 = vmul.f32 %v1777_v41, %v1639_v0  ;;  %v464_v54 = vmul.f32 %v1784_v39, %v1648_v32  ;;  %v1833_v26 = vmul.f32 0.25, %v2305_v5  ;;  %v465_v33 = vmul.f32 %v1787_v27, %v1650_v45 }
  0x82   : > { %v466_v56 = vmul.f32 %v1794_v50, %v1658_v61  ;;  %v467_v47 = vmul.f32 %v1797_v52, %v1660_v62  ;;  %v468_v3 = vmul.f32 %v1800_v53, %v1666_v63  ;;  %v469_v0 = vmul.f32 %v1803_v51, %v1672_v10 }
  0x83   : > { %v470_v32 = vmul.f32 %v1806_v8, %v1674_v1  ;;  %v471_v28 = vmul.f32 %v1809_v23, %v1676_v58  ;;  %v472_v45 = vmul.f32 %v1812_v22, %v1679_v11  ;;  %v473_v61 = vmul.f32 %v1815_v9, %v1681_v2 }
  0x84   : > { %v474_v62 = vmul.f32 %v1818_v18, %v1712_v13  ;;  %v478_v63 = vsub.f32 %v1744_v34, %v462_v15  ;;  %v475_v10 = vmul.f32 %v1823_v4, %v1715_v14  ;;  %v476_v1 = vmul.f32 %v1826_v55, %v2304_v20 }
  0x85   : > { %v479_v29 = vsub.f32 %v1747_v16, %v463_v21  ;;  %v480_v58 = vsub.f32 %v1750_v36, %v464_v54  ;;  %v477_v11 = vmul.f32 %v1833_v26, %v2305_v5  ;;  %v481_v2 = vsub.f32 %v1753_v37, %v465_v33 }
  0x86   : > { %v482_v30 = vsub.f32 %v1756_v44, %v466_v56  ;;  %v483_v13 = vsub.f32 %v1759_v46, %v467_v47  ;;  %v484_v31 = vsub.f32 %v1761_v59, %v468_v3  ;;  %v485_v14 = vsub.f32 %v1763_v6, %v469_v0 }
  0x87   : > { %v486_v34 = vsub.f32 %v1765_v48, %v470_v32  ;;  %v487_v35 = vsub.f32 %v1767_v60, %v471_v28  ;;  %v488_v16 = vsub.f32 %v1769_v7, %v472_v45  ;;  %v489_v17 = vsub.f32 %v1771_v24, %v473_v61 }
  0x88   : > { %v490_v36 = vsub.f32 %v1779_v25, %v474_v62  ;;  %v495_v38 = vmul.f32 0.33333334, %v478_v63  ;;  %v491_v37 = vsub.f32 %v1781_v12, %v475_v10  ;;  %v492_v42 = vsub.f32 %v1789_v40, %v476_v1 }
  0x89   : > { %v496_v44 = vmul.f32 0.33333334, %v479_v29  ;;  %v497_v46 = vmul.f32 0.33333334, %v480_v58  ;;  %v493_v43 = vsub.f32 %v1791_v49, %v477_v11  ;;  %v498_v57 = vmul.f32 0.33333334, %v481_v2 }
  0x8a   : > { %v499_v59 = vmul.f32 0.33333334, %v482_v30  ;;  %v500_v6 = vmul.f32 0.33333334, %v483_v13  ;;  %v501_v48 = vmul.f32 0.33333334, %v484_v31  ;;  %v657_v7 = vcombine.low %v1774_v19, %v1777_v41 }
  0x8b   : > { %v502_v60 = vmul.f32 0.33333334, %v485_v14  ;;  %v503_v15 = vmul.f32 0.33333334, %v486_v34  ;;  %v504_v24 = vmul.f32 0.33333334, %v487_v35  ;;  %v658_v12 = vcombine.low %v1784_v39, %v1787_v27 }
  0x8c   : > { %v505_v25 = vmul.f32 0.33333334, %v488_v16  ;;  %v1879_v20 = vmax.f32 %v495_v38, 0.0  ;;  %v506_v40 = vmul.f32 0.33333334, %v489_v17  ;;  %v1883_v54 = vmax.f32 %v496_v44, 0.0 }
  0x8d   : > { %v507_v21 = vmul.f32 0.33333334, %v490_v36  ;;  %v659_v49 = vcombine.low %v1794_v50, %v1797_v52  ;;  %v508_v5 = vmul.f32 0.33333334, %v491_v37  ;;  %v509_v33 = vmul.f32 0.33333334, %v492_v42 }
  0x8e   : > { %v1887_v56 = vmax.f32 %v497_v46, 0.0  ;;  %v660_v47 = vcombine.low %v1800_v53, %v1803_v51  ;;  %v510_v3 = vmul.f32 0.33333334, %v493_v43  ;;  %v1891_v0 = vmax.f32 %v498_v57, 0.0 }
  0x8f   : > { %v1893_v32 = vmax.f32 %v499_v59, 0.0  ;;  %v1470_v28 = vmov 1966171168   ;;  %v1897_v61 = vmax.f32 %v500_v6, 0.0  ;;  %v1899_v62 = vmax.f32 %v501_v48, 0.0 }
  0x90   : > { %v1895_v45 = vunpack.c.l.s4 %v1470_v28  ;;  %v1901_v63 = vmax.f32 %v502_v60, 0.0  ;;  %1308 = vrsqrt.f32 %v1879_v20  ;;  %v1904_v10 = vmax.f32 %v503_v15, 0.0 }
  0x91   : > { %v1906_v1 = vmax.f32 %v504_v24, 0.0  ;;  %v1908_v29 = vmax.f32 %v505_v25, 0.0  ;;  %1310 = vrsqrt.f32 %v1883_v54  ;;  %v1911_v58 = vmax.f32 %v506_v40, 0.0 }
  0x92   : > { %v1913_v11 = vmax.f32 %v507_v21, 0.0  ;;  %v1915_v2 = vmax.f32 %v508_v5, 0.0  ;;  %1312 = vrsqrt.f32 %v1887_v56  ;;  %v1918_v30 = vmax.f32 %v509_v33, 0.0 }
  0x93   : > { %v1920_v13 = vmax.f32 %v510_v3, 0.0  ;;  %vm529_vm1 = vcmp.eq.f32.partialorder %v1879_v20, inf  ;;  %1314 = vrsqrt.f32 %v1891_v0  ;;  %vm531_vm2 = vcmp.eq.f32.partialorder %v1879_v20, 0.0 }
  0x94   : > { %v532_v31 = vand.u32 2147483648, %v1879_v20  ;;  %vm536_vm3 = vcmp.eq.f32.partialorder %v1883_v54, inf  ;;  %1316 = vrsqrt.f32 %v1893_v32  ;;  %vm538_vm4 = vcmp.eq.f32.partialorder %v1883_v54, 0.0 }
  0x95   : > { %v539_v14 = vand.u32 2147483648, %v1883_v54  ;;  %vm543_vm5 = vcmp.eq.f32.partialorder %v1887_v56, inf  ;;  %1318 = vrsqrt.f32 %v1897_v61  ;;  %vm545_vm6 = vcmp.eq.f32.partialorder %v1887_v56, 0.0 }
  0x96   : > { %v546_v34 = vand.u32 2147483648, %v1887_v56  ;;  %vm550_vm7 = vcmp.eq.f32.partialorder %v1891_v0, inf  ;;  %1320 = vrsqrt.f32 %v1899_v62  ;;  %vm552_vm8 = vcmp.eq.f32.partialorder %v1891_v0, 0.0 }
  0x97   : > { %v553_v35 = vand.u32 2147483648, %v1891_v0  ;;  %vm557_vm9 = vcmp.eq.f32.partialorder %v1893_v32, inf  ;;  %1322 = vrsqrt.f32 %v1901_v63  ;;  %vm559_vm10 = vcmp.eq.f32.partialorder %v1893_v32, 0.0 }
  0x98   : > { %v560_v16 = vand.u32 2147483648, %v1893_v32  ;;  %vm564_vm11 = vcmp.eq.f32.partialorder %v1897_v61, inf  ;;  %1324 = vrsqrt.f32 %v1904_v10  ;;  %v567_v17 = vand.u32 2147483648, %v1897_v61 }
  0x99   : > { %v574_v36 = vand.u32 2147483648, %v1899_v62  ;;  %1326 = vrsqrt.f32 %v1906_v1  ;;  %vm578_vm15 = vcmp.eq.f32.partialorder %v1901_v63, inf  ;;  %v581_v37 = vand.u32 2147483648, %v1901_v63 }
  0x9a   : > { %v1309_v38 = vpop.eup %1308  ;;  %1328 = vrsqrt.f32 %v1908_v29  ;;  %v588_v46 = vand.u32 2147483648, %v1904_v10  ;;  %v595_v59 = vand.u32 2147483648, %v1906_v1  ;;  %vm594_vm13 = vcmp.eq.f32.partialorder %v1906_v1, 0.0 }
  0x9b   : > { %v1311_v42 = vpop.eup %1310  ;;  %v528_v44 = vmul.f32 %v1309_v38, %v1879_v20  ;;  %1330 = vrsqrt.f32 %v1911_v58  ;;  %vm601_vm12 = vcmp.eq.f32.partialorder %v1908_v29, 0.0  ;;  %v602_v15 = vand.u32 2147483648, %v1908_v29 }
  0x9c   : > { %v1313_v43 = vpop.eup %1312  ;;  %v535_v57 = vmul.f32 %v1311_v42, %v1883_v54  ;;  %1332 = vrsqrt.f32 %v1913_v11  ;;  %vm606_vm14 = vcmp.eq.f32.partialorder %v1911_v58, inf  ;;  %vm608_vm0 = vcmp.eq.f32.partialorder %v1911_v58, 0.0 }
  0x9d   : > { %v1315_v6 = vpop.eup %1314  ;;  %v530_v48 = vsel %vm529_vm1, %v1879_v20, %v528_v44  ;;  %v542_v60 = vmul.f32 %v1313_v43, %v1887_v56  ;;  %v609_v21 = vand.u32 2147483648, %v1911_v58  ;;  %vm613_vm1 = vcmp.eq.f32.partialorder %v1913_v11, inf }
  0x9e   : > { %v1317_v24 = vpop.eup %1316  ;;  %v537_v25 = vsel %vm536_vm3, %v1883_v54, %v535_v57  ;;  %v549_v40 = vmul.f32 %v1315_v6, %v1891_v0  ;;  %v1981_v33 = vsel %vm531_vm2, %v532_v31, %v530_v48  ;;  %vm615_vm3 = vcmp.eq.f32.partialorder %v1913_v11, 0.0 }
  0x9f   : > { %v1319_v5 = vpop.eup %1318  ;;  %v544_v3 = vsel %vm543_vm5, %v1887_v56, %v542_v60  ;;  %v556_v28 = vmul.f32 %v1317_v24, %v1893_v32  ;;  %1334 = vrsqrt.f32 %v1915_v2  ;;  %v1991_v42 = vsel %vm538_vm4, %v539_v14, %v537_v25 }
  0xa0   : > { %v1321_v38 = vpop.eup %1320  ;;  %v551_v20 = vsel %vm550_vm7, %v1891_v0, %v549_v40  ;;  %v563_v31 = vmul.f32 %v1319_v5, %v1897_v61  ;;  %v616_v44 = vand.u32 2147483648, %v1913_v11  ;;  %v2000_v57 = vsel %vm545_vm6, %v546_v34, %v544_v3 }
  0xa1   : > { %v1323_v43 = vpop.eup %1322  ;;  %v558_v6 = vsel %vm557_vm9, %v1893_v32, %v556_v28  ;;  %v570_v54 = vmul.f32 %v1321_v38, %v1899_v62  ;;  %vm620_vm2 = vcmp.eq.f32.partialorder %v1915_v2, inf  ;;  %v2009_v48 = vsel %vm552_vm8, %v553_v35, %v551_v20 }
  0xa2   : > { %v1325_v14 = vpop.eup %1324  ;;  %v565_v60 = vsel %vm564_vm11, %v1897_v61, %v563_v31  ;;  %v577_v56 = vmul.f32 %v1323_v43, %v1901_v63  ;;  %vm622_vm4 = vcmp.eq.f32.partialorder %v1915_v2, 0.0  ;;  %v2018_v24 = vsel %vm559_vm10, %v560_v16, %v558_v6 }
  0xa3   : > { %v1327_v34 = vpop.eup %1326  ;;  %vm2306_vm5 = vcmp.eq.f32.partialorder %v1899_v62, inf  ;;  %v584_v0 = vmul.f32 %v1325_v14, %v1904_v10  ;;  %1336 = vrsqrt.f32 %v1918_v30  ;;  %vm2307_vm6 = vcmp.eq.f32.partialorder %v1897_v61, 0.0 }
  0xa4   : > { %v572_v25 = vsel %vm2306_vm5, %v1899_v62, %v570_v54  ;;  %v1329_v35 = vpop.eup %1328  ;;  %v2029_v40 = vsel %vm2307_vm6, %v567_v17, %v565_v60  ;;  %v579_v32 = vsel %vm578_vm15, %v1901_v63, %v577_v56  ;;  %v591_v16 = vmul.f32 %v1327_v34, %v1906_v1 }
  0xa5   : > { %v623_v5 = vand.u32 2147483648, %v1915_v2  ;;  %v1331_v3 = vpop.eup %1330  ;;  %vm2308_vm7 = vcmp.eq.f32.partialorder %v1899_v62, 0.0  ;;  %vm2309_vm8 = vcmp.eq.f32.partialorder %v1904_v10, inf  ;;  %v598_v17 = vmul.f32 %v1329_v35, %v1908_v29 }
  0xa6   : > { %v2040_v28 = vsel %vm2308_vm7, %v574_v36, %v572_v25  ;;  %v586_v61 = vsel %vm2309_vm8, %v1904_v10, %v584_v0  ;;  %vm627_vm9 = vcmp.eq.f32.partialorder %v1918_v30, inf  ;;  %v1333_v38 = vpop.eup %1332  ;;  %vm2310_vm10 = vcmp.eq.f32.partialorder %v1901_v63, 0.0 }
  0xa7   : > { %v582_v20 = vsel %vm2310_vm10, %v581_v37, %v579_v32  ;;  %vm2311_vm11 = vcmp.eq.f32.partialorder %v1906_v1, inf  ;;  %v605_v36 = vmul.f32 %v1331_v3, %v1911_v58  ;;  %vm629_vm15 = vcmp.eq.f32.partialorder %v1918_v30, 0.0 }
  0xa8   : > { %v593_v62 = vsel %vm2311_vm11, %v1906_v1, %v591_v16  ;;  %vm2312_vm5 = vcmp.eq.f32.partialorder %v1904_v10, 0.0  ;;  %vm2313_vm6 = vcmp.eq.f32.partialorder %v1908_v29, inf  ;;  %v612_v63 = vmul.f32 %v1333_v38, %v1913_v11 }
  0xa9   : > { %v589_v31 = vsel %vm2312_vm5, %v588_v46, %v586_v61  ;;  %v600_v43 = vsel %vm2313_vm6, %v1908_v29, %v598_v17  ;;  %1338 = vrsqrt.f32 %v1920_v13  ;;  %v596_v37 = vsel %vm594_vm13, %v595_v59, %v593_v62  ;;  %v1335_v54 = vpop.eup %1334  ;;  %v639_v61 = vld [vmem:[#allocation2] sm:$0xff]  ;;  %v640_v62 = vld [vmem:[#allocation2 + $0x8] sm:$0xff] }
  0xaa   : > { %v2069_v6 = vsel %vm601_vm12, %v602_v15, %v600_v43  ;;  %v607_v10 = vsel %vm606_vm14, %v1911_v58, %v605_v36  ;;  %v630_v46 = vand.u32 2147483648, %v1918_v30  ;;  %v614_v60 = vsel %vm613_vm1, %v1913_v11, %v612_v63 }
  0xab   : > { %v610_v14 = vsel %vm608_vm0, %v609_v21, %v607_v10  ;;  %vm634_vm13 = vcmp.eq.f32.partialorder %v1920_v13, inf  ;;  %v637_v1 = vand.u32 2147483648, %v1920_v13  ;;  %v663_v29 = vunpack.c.0.s8 %v1895_v45 }
  0xac   : > { %v617_v59 = vsel %vm615_vm3, %v616_v44, %v614_v60  ;;  %v619_v15 = vmul.f32 %v1335_v54, %v1915_v2  ;;  %vm636_vm12 = vcmp.eq.f32.partialorder %v1920_v13, 0.0  ;;  %v2314_v56 = vlaneseq  ;;  %v761_v60 = vld [vmem:[#allocation3] sm:$0xff] }
  0xad   : > { %v706_v21 = vcombine.low %v1806_v8, %v1809_v23  ;;  %v707_v34 = vcombine.low %v1812_v22, %v1815_v9  ;;  %v708_v25 = vcombine.low %v1818_v18, %v1823_v4  ;;  %v709_v45 = vcombine.low %v1826_v55, %v1833_v26  ;;  %v1337_v22 = vpop.eup %1336 }
  0xae   : > { %v2088_v58 = vshrl.u32 %v2314_v56, 7  ;;  %v779_v11 = vcombine.low %v1981_v33, %v1991_v42  ;;  %v621_v44 = vsel %vm620_vm2, %v1915_v2, %v619_v15  ;;  %v780_v8 = vcombine.low %v2000_v57, %v2009_v48 }
  0xaf   : > { %v781_v23 = vcombine.low %v2018_v24, %v2029_v40  ;;  %v624_v9 = vsel %vm622_vm4, %v623_v5, %v621_v44  ;;  %v782_v18 = vcombine.low %v2040_v28, %v582_v20  ;;  %v828_v4 = vcombine.low %v589_v31, %v596_v37 }
  0xb0   : > { %v666_v0 = vsub.s32 %v663_v29, %v2088_v58  ;;  %v829_v55 = vcombine.low %v2069_v6, %v610_v14  ;;  %v626_v26 = vmul.f32 %v1337_v22, %v1918_v30  ;;  %v2138_v44 = vsub.s32 (!%p1233_p7), 0, %v2088_v58 }
  0xb1   : > { %vm971_vm14 = vcmask (!%p1233_p7), 1040384   ;;  %vm1140_vm0 = vcmask (!%p1233_p7), 0  }
  0xb2   : > { %v667_v33 = vrot.slane %v657_v7, %v666_v0  ;;  %v674_v42 = vrot.slane %v658_v12, %v666_v0  ;;  %v681_v2 = vrot.slane %v659_v49, %v666_v0  ;;  %v688_v57 = vrot.slane %v660_v47, %v666_v0 }
  0xb3   : > { %v716_v48 = vrot.slane %v706_v21, %v666_v0  ;;  %v723_v24 = vrot.slane %v707_v34, %v666_v0  ;;  %v730_v35 = vrot.slane %v708_v25, %v666_v0  ;;  %v628_v19 = vsel %vm627_vm9, %v1918_v30, %v626_v26  ;;  %v1339_v39 = vpop.eup %1338  ;;  %v762_v34 = vld [vmem:[#allocation3 + $0x8] sm:$0xff] }
  0xb4   : > { %v689_v41 = vcombine.low %v667_v33, %v674_v42  ;;  %v737_v7 = vrot.slane %v709_v45, %v666_v0  ;;  %v789_v40 = vrot.slane %v779_v11, %v666_v0  ;;  %v631_v27 = vsel %vm629_vm15, %v630_v46, %v628_v19 }
  0xb5   : > { %v690_v50 = vcombine.low %v681_v2, %v688_v57  ;;  %v738_v52 = vcombine.low %v716_v48, %v723_v24  ;;  %v796_v12 = vrot.slane %v780_v8, %v666_v0  ;;  %v633_v53 = vmul.f32 %v1339_v39, %v1920_v13 }
  0xb6   : > { %v697_v51 = vrot.slane %v689_v41, %v666_v0  ;;  %v739_v49 = vcombine.low %v730_v35, %v737_v7  ;;  %v803_v47 = vrot.slane %v781_v23, %v666_v0  ;;  %v810_v5 = vrot.slane %v782_v18, %v666_v0 }
  0xb7   : > { %v704_v32 = vrot.slane %v690_v50, %v666_v0  ;;  %v746_v16 = vrot.slane %v738_v52, %v666_v0  ;;  %v811_v3 = vcombine.low %v789_v40, %v796_v12  ;;  %v635_v28 = vsel %vm634_vm13, %v1920_v13, %v633_v53 }
  0xb8   : > { %v753_v17 = vrot.slane %v739_v49, %v666_v0  ;;  %v830_v30 = vcombine.low %v617_v59, %v624_v9  ;;  %v838_v38 = vrot.slane %v828_v4, %v666_v0  ;;  %v638_v20 = vsel %vm636_vm12, %v637_v1, %v635_v28 }
  0xb9   : > { %v705_v36 = vcombine.low %v697_v51, %v704_v32  ;;  %v812_v31 = vcombine.low %v803_v47, %v810_v5  ;;  %v819_v43 = vrot.slane %v811_v3, %v666_v0  ;;  %v831_v37 = vcombine.low %v631_v27, %v638_v20 }
  0xba   : > { %v754_v63 = vcombine.low %v746_v16, %v753_v17  ;;  %v845_v6 = vrot.slane %v829_v55, %v666_v0  ;;  %v852_v10 = vrot.slane %v830_v30, %v666_v0  ;;  %v2141_v8 = vsub.s32 (!%p1233_p7), 1, %v2088_v58 }
  0xbb   : > { %v757_v46 = vadd.f32 %v705_v36, %v639_v61  ;;  %v826_v54 = vrot.slane %v812_v31, %v666_v0  ;;  %v859_v29 = vrot.slane %v831_v37, %v666_v0  ;;  %v2144_v23 = vsub.s32 (!%p1233_p7), 2, %v2088_v58 }
  0xbc   : > { %v758_v14 = vadd.f32 %v754_v63, %v640_v62  ;;  %v860_v15 = vcombine.low %v838_v38, %v845_v6  ;;  %v2153_v4 = vsub.s32 (!%p1233_p7), 4, %v2088_v58  ;;  %v2157_v26 = vsub.s32 (!%p1233_p7), 5, %v2088_v58 }
  0xbd   : > { %759 = vst [vmem:[#allocation2] sm:$0xff] %v757_v46  ;;  %v827_v59 = vcombine.low %v819_v43, %v826_v54  ;;  %v861_v56 = vcombine.low %v852_v10, %v859_v29  ;;  %v2160_v33 = vsub.s32 (!%p1233_p7), 6, %v2088_v58  ;;  %v2168_v41 = vsub.s32 (!%p1233_p7), 7, %v2088_v58 }
  0xbe   : > { %760 = vst [vmem:[#allocation2 + $0x8] sm:$0xff] %v758_v14  ;;  %v868_v13 = vrot.slane %v860_v15, %v666_v0 }
  0xbf   : > { %v879_v1 = vadd.f32 %v827_v59, %v761_v60  ;;  %v875_v21 = vrot.slane %v861_v56, %v666_v0  ;;  %886 = sbr.rel (%p1233_p7) target bundleno = 453 (0x1c5), region = 36  ;;  %v2147_v0 = vsub.s32 (!%p1233_p7), 3, %v2088_v58 }
  0xc1   : > { %881 = vst [vmem:[#allocation3] sm:$0xff] %v879_v1  ;;  %v876_v25 = vcombine.low %v868_v13, %v875_v21 }
  0xc3   : > { %v880_v45 = vadd.f32 %v876_v25, %v762_v34 }
  0xc4   : > { %v887_v11 = vld [vmem:[#allocation2] sm:$0xff] (!%p1233_p7) }
  0xc5   : > { %882 = vst [vmem:[#allocation3 + $0x8] sm:$0xff] %v880_v45  ;;  %v894_v22 = vrot.slane (!%p1233_p7), %v887_v11, %v2138_v44  ;;  %v898_v9 = vrot.slane (!%p1233_p7), %v887_v11, %v2141_v8  ;;  %v902_v18 = vrot.slane (!%p1233_p7), %v887_v11, %v2144_v23  ;;  %v906_v55 = vrot.slane (!%p1233_p7), %v887_v11, %v2147_v0  ;;  %v2172_v27 = vld [vmem:[#allocation2 + $0x8] sm:$0xff] (!%p1233_p7) }
  0xc6   : > { %v910_v42 = vrot.slane %v887_v11, %v2153_v4  ;;  %v914_v19 = vrot.slane %v887_v11, %v2157_v26  ;;  %v918_v40 = vrot.slane %v887_v11, %v2160_v33  ;;  %v922_v49 = vrot.slane %v887_v11, %v2168_v41 }
  0xc7   : > { %v972_v2 = vsel %vm971_vm14, %v894_v22, 0.0  ;;  %v973_v57 = vsel %vm971_vm14, %v898_v9, 0.0  ;;  %v975_v48 = vsel %vm971_vm14, %v902_v18, 0.0  ;;  %v977_v7 = vsel %vm971_vm14, %v906_v55, 0.0 }
  0xc8   : > { %v974_v24 = vadd.f32 %v973_v57, %v972_v2  ;;  %v1013_v35 = vld [vmem:[#allocation3] sm:$0xff]  ;;  %v979_v50 = vsel %vm971_vm14, %v910_v42, 0.0  ;;  %v981_v58 = vsel %vm971_vm14, %v914_v19, 0.0  ;;  %v926_v32 = vrot.slane %v2172_v27, %v2138_v44 }
  0xc9   : > { %v1024_v52 = vrot.slane %v1013_v35, %v2141_v8  ;;  %v1028_v12 = vrot.slane %v1013_v35, %v2144_v23  ;;  %v1020_v51 = vrot.slane %v1013_v35, %v2138_v44  ;;  %v1032_v47 = vrot.slane %v1013_v35, %v2147_v0 }
  0xca   : > { %v976_v39 = vadd.f32 %v975_v48, %v974_v24  ;;  %v983_v5 = vsel %vm971_vm14, %v918_v40, 0.0  ;;  %v1036_v3 = vrot.slane %v1013_v35, %v2153_v4  ;;  %v930_v20 = vrot.slane %v2172_v27, %v2141_v8 }
  0xcb   : > { %v1097_v28 = vsel %vm971_vm14, %v1020_v51, 0.0  ;;  %v1098_v61 = vsel %vm971_vm14, %v1024_v52, 0.0  ;;  %v1100_v17 = vsel %vm971_vm14, %v1028_v12, 0.0  ;;  %v985_v62 = vsel %vm971_vm14, %v922_v49, 0.0 }
  0xcc   : > { %v978_v53 = vadd.f32 %v977_v7, %v976_v39  ;;  %v1099_v38 = vadd.f32 %v1098_v61, %v1097_v28  ;;  %v1040_v36 = vrot.slane %v1013_v35, %v2157_v26  ;;  %v1102_v31 = vsel %vm971_vm14, %v1032_v47, 0.0  ;;  %v1014_v14 = vld [vmem:[#allocation3 + $0x8] sm:$0xff] }
  0xcd   : > { %v934_v37 = vrot.slane %v2172_v27, %v2144_v23  ;;  %v987_v6 = vsel %vm971_vm14, %v926_v32, 0.0  ;;  %v1044_v10 = vrot.slane %v1013_v35, %v2160_v33  ;;  %v1104_v46 = vsel %vm971_vm14, %v1036_v3, 0.0 }
  0xce   : > { %v980_v16 = vadd.f32 %v979_v50, %v978_v53  ;;  %v1101_v63 = vadd.f32 %v1100_v17, %v1099_v38  ;;  %v938_v29 = vrot.slane %v2172_v27, %v2147_v0  ;;  %v989_v15 = vsel %vm971_vm14, %v930_v20, 0.0 }
  0xcf   : > { %v1048_v59 = vrot.slane %v1013_v35, %v2168_v41  ;;  %v1106_v56 = vsel %vm971_vm14, %v1040_v36, 0.0  ;;  %v942_v21 = vrot.slane %v2172_v27, %v2153_v4  ;;  %v991_v34 = vsel %vm971_vm14, %v934_v37, 0.0 }
  0xd0   : > { %v982_v30 = vadd.f32 %v981_v58, %v980_v16  ;;  %v1103_v60 = vadd.f32 %v1102_v31, %v1101_v63  ;;  %v1052_v25 = vrot.slane %v1014_v14, %v2138_v44  ;;  %v1108_v45 = vsel %vm971_vm14, %v1044_v10, 0.0 }
  0xd1   : > { %v946_v9 = vrot.slane %v2172_v27, %v2157_v26  ;;  %v993_v18 = vsel %vm971_vm14, %v938_v29, 0.0  ;;  %v1056_v55 = vrot.slane %v1014_v14, %v2141_v8  ;;  %v1110_v42 = vsel %vm971_vm14, %v1048_v59, 0.0 }
  0xd2   : > { %v984_v43 = vadd.f32 %v983_v5, %v982_v30  ;;  %v1105_v1 = vadd.f32 %v1104_v46, %v1103_v60  ;;  %v950_v48 = vrot.slane %v2172_v27, %v2160_v33  ;;  %v995_v44 = vsel %vm971_vm14, %v942_v21, 0.0 }
  0xd3   : > { %v1060_v24 = vrot.slane %v1014_v14, %v2144_v23  ;;  %v1112_v35 = vsel %vm971_vm14, %v1052_v25, 0.0  ;;  %v954_v40 = vrot.slane %v2172_v27, %v2168_v41  ;;  %v997_v8 = vsel %vm971_vm14, %v946_v9, 0.0 }
  0xd4   : > { %v986_v54 = vadd.f32 %v985_v62, %v984_v43  ;;  %v1107_v22 = vadd.f32 %v1106_v56, %v1105_v1  ;;  %v1064_v39 = vrot.slane %v1014_v14, %v2147_v0  ;;  %v1114_v50 = vsel %vm971_vm14, %v1056_v55, 0.0 }
  0xd5   : > { %v999_v53 = vsel %vm971_vm14, %v950_v48, 0.0  ;;  %v1068_v51 = vrot.slane %v1014_v14, %v2153_v4  ;;  %v1116_v23 = vsel %vm971_vm14, %v1060_v24, 0.0  ;;  %v1001_v47 = vsel %vm971_vm14, %v954_v40, 0.0 }
  0xd6   : > { %v988_v13 = vadd.f32 %v987_v6, %v986_v54  ;;  %v1109_v57 = vadd.f32 %v1108_v45, %v1107_v22  ;;  %v1072_v27 = vrot.slane %v1014_v14, %v2157_v26  ;;  %v1118_v32 = vsel %vm971_vm14, %v1064_v39, 0.0 }
  0xd7   : > { %v1076_v5 = vrot.slane %v1014_v14, %v2160_v33  ;;  %v1120_v3 = vsel %vm971_vm14, %v1068_v51, 0.0  ;;  %v1080_v4 = vrot.slane %v1014_v14, %v2168_v41 }
  0xd8   : > { %v990_v11 = vadd.f32 %v989_v15, %v988_v13  ;;  %v1111_v7 = vadd.f32 %v1110_v42, %v1109_v57  ;;  %v1122_v17 = vsel %vm971_vm14, %v1072_v27, 0.0 }
  0xd9   : > { %v1124_v38 = vsel %vm971_vm14, %v1076_v5, 0.0  ;;  %v1126_v26 = vsel %vm971_vm14, %v1080_v4, 0.0 }
  0xda   : > { %v992_v2 = vadd.f32 %v991_v34, %v990_v11  ;;  %v1113_v12 = vadd.f32 %v1112_v35, %v1111_v7 }
  0xdc   : > { %v994_v19 = vadd.f32 %v993_v18, %v992_v2  ;;  %v1115_v58 = vadd.f32 %v1114_v50, %v1113_v12 }
  0xde   : > { %v996_v52 = vadd.f32 %v995_v44, %v994_v19  ;;  %v1117_v0 = vadd.f32 %v1116_v23, %v1115_v58 }
  0xe0   : > { %v998_v49 = vadd.f32 %v997_v8, %v996_v52  ;;  %v1119_v61 = vadd.f32 %v1118_v32, %v1117_v0 }
  0xe2   : > { %v1000_v16 = vadd.f32 %v999_v53, %v998_v49  ;;  %v1121_v30 = vadd.f32 %v1120_v3, %v1119_v61 }
  0xe4   : > { %v1002_v28 = vadd.f32 %v1001_v47, %v1000_v16  ;;  %v1123_v20 = vadd.f32 %v1122_v17, %v1121_v30 }
  0xe6   : > { %1003 = vadd.xlane.f32.xlu0 %v1002_v28  ;;  %v1125_v62 = vadd.f32 %v1124_v38, %v1123_v20 }
  0xe8   : > { %v1127_v36 = vadd.f32 %v1126_v26, %v1125_v62 }
  0xea   : > { %1128 = vadd.xlane.f32.xlu0 %v1127_v36 }
 0x173   : > { %v1004_v31 = vpop.xlane.xlu0 %1003 }
 0x174   : > { %v1005_v33 = vrot.slane %v1004_v31, 4 }
 0x176   : > { %v1006_v43 = vadd.f32 %v1005_v33, %v1004_v31 }
 0x177   : > { %v1129_v6 = vpop.xlane.xlu0 %1128 }
 0x178   : > { %v1007_v63 = vrot.slane %v1006_v43, 2  ;;  %v1130_v10 = vrot.slane %v1129_v6, 4 }
 0x17a   : > { %v1008_v37 = vadd.f32 %v1007_v63, %v1006_v43  ;;  %v1131_v46 = vadd.f32 %v1130_v10, %v1129_v6 }
 0x17c   : > { %v1009_v41 = vrot.slane %v1008_v37, 1  ;;  %v1132_v14 = vrot.slane %v1131_v46, 2 }
 0x17e   : > { %v1010_v54 = vadd.f32 %v1009_v41, %v1008_v37  ;;  %v1133_v60 = vadd.f32 %v1132_v14, %v1131_v46 }
 0x180   : > { %1241 = vpush %v1010_v54  ;;  %v1134_v29 = vrot.slane %v1133_v60, 1 }
 0x182   : > { %v1135_v15 = vadd.f32 %v1134_v29, %v1133_v60 }
 0x184   : > { %1243 = vpush %v1135_v15 }
 0x1b1   : > { %s1242_s12 = spop %1241 }
 0x1b2   : > { %v1012_v59 = vstv %s1242_s12 }
 0x1b3   : > { %v1139_v56 = vmul.f32 0.00024414063, %v1012_v59 }
 0x1b5   : > { %1141 = vst.msk [vmem:[#allocation7] sm:$0x1] %vm1140_vm0, %v1139_v56  ;;  %s1244_s18 = spop %1243 }
 0x1b6   : > { %v1137_v13 = vstv %s1244_s18 }
 0x1b7   : > { %1340 = vrcp.f32 %v1137_v13 }
 0x1c1   : > { %v1341_v1 = vpop.eup %1340 }
 0x1c2   : > { %v1143_v21 = vmul.f32 4096.0, %v1341_v1 }
 0x1c4   : > { %1144 = vst.msk [vmem:[#allocation8] sm:$0x1] %vm1140_vm0, %v1143_v21 }
 0x1c5 PF: > { %p1260_p8 = scmp.eq.s32.totalorder %s1507_s13, 1  ;;  %s1471_s22 = smov [#allocation7]  }
 0x1c6   : > { %s1152_s23 = sshll.u32 %s1471_s22, 4  ;;  %s1472_s24 = smov [#allocation8]   ;;  %s1153_s23 = int_to_ptr.vmem [resolvable:$true] %s1152_s23 }
 0x1c7   : > { %s1163_s25 = sshll.u32 %s1472_s24, 4  ;;  %s1372_s26 = scalar_lea.vmem %s1153_s23, 16  ;;  %s1164_s25 = int_to_ptr.vmem [resolvable:$true] %s1163_s25 }
 0x1c8   : > { %p1373_p10 = scmp.ne.s32.totalorder %s1153_s23, %s1372_s26  ;;  %s1378_s27 = scalar_lea.vmem %s1153_s23, 32 }
 0x1c9   : > { %p1379_p11 = scmp.lt.s32.totalorder %s1153_s23, %s1153_s23  ;;  %p1380_p13 = scmp.lt.s32.totalorder %s1378_s27, %s1372_s26 }
 0x1ca   : > { %p1374_p5 = pnand %p1373_p10, %p1260_p8 }
 0x1cb   : > { %p1381_p1 = por %p1380_p13, %p1379_p11 }
 0x1cc   : > { %p1375_p6 = pneg %p1374_p5 }
 0x1ce   : > { %p1382_p2 = pnand %p1381_p1, %p1375_p6 }
 0x1d0   : > { %1385 = shalt.err (!%p1382_p2)
}
 0x1d1   : > { %s1386_s30 = scalar_lea.hbm %s2294_s1, 16 }
 0x1d2   : > { %p1387_p3 = scmp.ne.s32.totalorder %s2294_s1, %s1386_s30  ;;  %p1392_p12 = scmp.lt.u32.totalorder %s1386_s30, %s2294_s1 }
 0x1d4   : > { %p1388_p0 = pnand %p1387_p3, %p1260_p8 }
 0x1d6   : > { %p1389_p4 = pneg %p1388_p0 }
 0x1d8   : > { %p1394_p9 = pnand %p1392_p12, %p1389_p4 }
 0x1da   : > { %1397 = shalt.err (!%p1394_p9)
}
 0x1db   : > { %1248 = dma.vmem_to_hbm [thread:$0]  (%p1260_p8), %s1153_s23, 16, %s2294_s1, [#allocation6]  }
 0x1dc   : > { %s1398_s9 = scalar_lea.vmem %s1164_s25, 16  ;;  %s1404_s15 = scalar_lea.vmem %s1164_s25, 32 }
 0x1dd   : > { %p1399_p7 = scmp.ne.s32.totalorder %s1164_s25, %s1398_s9  ;;  %p1405_p6 = scmp.lt.s32.totalorder %s1164_s25, %s1164_s25 }
 0x1de   : > { %p1406_p11 = scmp.lt.s32.totalorder %s1404_s15, %s1398_s9 }
 0x1df   : > { %p1400_p10 = pnand %p1399_p7, %p1260_p8 }
 0x1e0   : > { %p1407_p13 = por %p1406_p11, %p1405_p6 }
 0x1e1   : > { %p1401_p5 = pneg %p1400_p10 }
 0x1e3   : > { %p1408_p1 = pnand %p1407_p13, %p1401_p5 }
 0x1e5   : > { %1411 = shalt.err (!%p1408_p1)
}
 0x1e6   : > { %s1412_s20 = scalar_lea.hbm %s2295_s2, 16 }
 0x1e7   : > { %p1413_p2 = scmp.ne.s32.totalorder %s2295_s2, %s1412_s20  ;;  %p1418_p4 = scmp.lt.u32.totalorder %s1412_s20, %s2295_s2 }
 0x1e9   : > { %p1414_p3 = pnand %p1413_p2, %p1260_p8 }
 0x1eb   : > { %p1415_p0 = pneg %p1414_p3 }
 0x1ed   : > { %p1420_p12 = pnand %p1418_p4, %p1415_p0 }
 0x1ef   : > { %1423 = shalt.err (!%p1420_p12)
}
 0x1f0   : > { %1250 = dma.vmem_to_hbm [thread:$0]  (%p1260_p8), %s1164_s25, 16, %s2295_s2, [#allocation9]  }
 0x1f1   : > { %1445 = dma.done.wait (%p1260_p8), [#allocation6], 16  }
 0x1f2   : > { %1447 = vsyncadd (%p1260_p8), [#allocation6], 4294967280 }
 0x1f3   : > { %1449 = dma.done.wait (%p1260_p8), [#allocation9], 16  }
 0x1f4   : > { %1451 = vsyncadd (%p1260_p8), [#allocation9], 4294967280 }
 0x1f5 PF: > { %p15_p9 = scmp.ge.s32.totalorder %s1510_s14, 4   ;;  %s2315_s9 = smov %s1458_s10 }
 0x1f6   : > { %s2316_s10 = smov %s1462_s11  ;;  %s2317_s11 = smov %s1520_s17 }
 0x1f7   : > { %s2318_s12 = smov %s1510_s14  ;;  %17 = sbr.rel (!%p15_p9) target bundleno = 5 (0x5), region = 77 }
 0x1fe   :  { %1180 = vsyncpa [#allocation5], 1 }
 0x1ff   :  { %1182 = vsyncpa [#allocation5 + $0x1], 1 }
 0x200   :  { %1183 = vsyncpa [#allocation6], 1 }
 0x201   :  { %1185 = vsyncpa [#allocation6 + $0x1], 1 }
 0x202   :  { %1186 = vsyncpa [#allocation9], 1 }

</bundles_post_ra>
